<compile_context>
chip_gen: v7x
topology: tpu7x:2x2x1
jax: 0.10.0
libtpu: 0.0.40
codegen_flags: <defaults>
</compile_context>

<pallas_src>
import functools

import jax
import jax.numpy as jnp
from jax import lax
from jax.experimental import pallas as pl
from jax.experimental.pallas import tpu as pltpu


# ----------------------------------------------------------------------------
# Fused kernel: mlp_layers + CNN encoder + attention + merge (one batch tile)
# ----------------------------------------------------------------------------
def hdrl_fused_kernel(mvec_ref, x_ref, w1_ref, b1_ref, w2_ref, b2_ref,
                      w3_ref, b3_ref, g_ref, beta_ref, cw_ref, cb_ref,
                      sq_ref, o_ref, *, l_out, f_orig):
    """Per grid step (F padded to Fp = multiple of 128, zero lanes >= f_orig):
      mvec_ref : (TB, id_num)    f32     x_ref : (TB, M, Lp, D) bf16
      w1/b1    : (id_num,h1)/(1,h1) f32  w2/b2 : (h1,h2)/(1,h2) f32
      w3/b3    : (h2,Fp)/(1,Fp)  f32     g/beta: (1,Fp) f32
      cw_ref   : (k*D, Fp) bf16          cb_ref/sq_ref : (1, Fp) f32
      o_ref    : (TB, Fp) f32
    """
    tb, m, lp, d = x_ref.shape
    kd, fp = cw_ref.shape
    k = kd // d
    n = tb * m

    # ---- mlp_layers: Linear/ReLU x2 -> Linear -> LayerNorm (all f32) --------
    mv = mvec_ref[...]
    h = jnp.maximum(jnp.dot(mv, w1_ref[...],
                            preferred_element_type=jnp.float32) + b1_ref[...], 0.0)
    h = jnp.maximum(jnp.dot(h, w2_ref[...],
                            preferred_element_type=jnp.float32) + b2_ref[...], 0.0)
    y = jnp.dot(h, w3_ref[...], preferred_element_type=jnp.float32) + b3_ref[...]
    # LayerNorm statistics over the *original* f_orig features only (padded
    # lanes of y are exactly 0 but must not enter mean/var).
    lane = lax.broadcasted_iota(jnp.int32, (tb, fp), 1)
    valid = lane < f_orig
    mu = jnp.sum(y, axis=-1, keepdims=True) / f_orig            # pad lanes are 0
    diff = jnp.where(valid, y - mu, 0.0)
    var = jnp.sum(diff * diff, axis=-1, keepdims=True) / f_orig  # biased, like torch
    mvec_fea = (y - mu) * lax.rsqrt(var + 1e-5) * g_ref[...] + beta_ref[...]
    # padded lanes: (0 - mu) * rsqrt * 0 + 0 == 0  -> output stays lane-clean.

    # ---- CNN review encoder: im2col conv (single bf16 matmul) + ReLU + pool -
    # The k shifted bf16 input windows are concatenated along the contraction
    # dim -> ONE (n*l_out, k*D) @ (k*D, Fp) MXU matmul (f32 accumulation),
    # instead of k per-tap matmuls + f32 output slicing/adds.
    x = x_ref[...]                                                # bf16
    taps = [x[:, :, kk:kk + l_out, :].reshape(n * l_out, d) for kk in range(k)]
    xcat = jnp.concatenate(taps, axis=-1)                         # (n*l_out, k*D)
    conv = jnp.dot(xcat, cw_ref[...], preferred_element_type=jnp.float32)
    conv = jnp.maximum(conv + cb_ref[...], 0.0).reshape(n, l_out, fp)
    r_fea = jnp.max(conv, axis=1).reshape(tb, m, fp)              # >= 0, pads stay 0

    # ---- review attention (att_method='add', review_weight='softmax') ------
    sq = sq_ref[...] + mvec_fea                                   # (TB, Fp)
    aw = jnp.sum(r_fea * sq[:, None, :], axis=-1)                 # (TB, M)
    aw = aw - jnp.max(aw, axis=-1, keepdims=True)
    e = jnp.exp(aw)
    score = e * pl.reciprocal(jnp.sum(e, axis=-1, keepdims=True), approx=True)
    # F.relu(r_fea) == r_fea here (max over ReLU'd conv outputs, l_out >= 1).
    pooled = jnp.sum(r_fea * score[:, :, None], axis=1)

    # ---- rm_merge='add' -----------------------------------------------------
    o_ref[...] = pooled + mvec_fea


# ----------------------------------------------------------------------------
# Wrapper (embedding gathers / parameter padding stay as cheap XLA glue)
# ----------------------------------------------------------------------------
def hdrl_forward(review, index, word_embs, id_embedding, mlp_params,
                 conv_w, conv_b, s_query_v, kernel_size, max_num, review_len,
                 *, tile_b=8):
    B, M, L = review.shape
    assert (M, L) == (max_num, review_len)
    vocab, D = word_embs.shape
    Fn = conv_w.shape[-1]
    k = kernel_size
    pad = k // 2
    lp_true = L + 2 * pad
    l_out = lp_true - k + 1                  # conv output length (torch padded conv)
    Lp = ((lp_true + 15) // 16) * 16         # align length for clean vreg layouts
    Fp = ((Fn + 127) // 128) * 128           # lane-dense filter dim

    # Conv zero-padding fused into the gather: append a zero row to the word
    # table and pad the token ids with that index -> padded activation is
    # materialized exactly once, in bf16.
    # TODO(synk): fold this gather into the kernel (PrefetchScalarGridSpec row
    # gather) so rev_emb never hits HBM at all.
    we = jnp.concatenate([word_embs, jnp.zeros((1, D), word_embs.dtype)], axis=0)
    we = we.astype(jnp.bfloat16)
    ids = jnp.pad(review, ((0, 0), (0, 0), (pad, Lp - L - pad)),
                  constant_values=vocab)
    rev_emb = jnp.take(we, ids, axis=0)                          # (B, M, Lp, D) bf16
    mvec = jnp.take(id_embedding, index, axis=0)                 # (B, id_num) f32

    # Lane-pad F-sized params to Fp with zeros; conv weight flattened to the
    # im2col layout (k*D, Fp) in bf16 so the kernel does no weight reshaping.
    p = mlp_params
    w3p = jnp.pad(p["w3"], ((0, 0), (0, Fp - Fn)))
    b3p = jnp.pad(p["b3"], ((0, 0), (0, Fp - Fn)))
    gp = jnp.pad(p["g"], ((0, 0), (0, Fp - Fn)))
    betap = jnp.pad(p["beta"], ((0, 0), (0, Fp - Fn)))
    cw = jnp.pad(conv_w, ((0, 0), (0, 0), (0, Fp - Fn)))
    cw = cw.reshape(k * D, Fp).astype(jnp.bfloat16)
    cb = jnp.pad(conv_b, ((0, 0), (0, Fp - Fn)))
    sq = jnp.pad(s_query_v, ((0, 0), (0, Fp - Fn)))

    # Batch tiling: grid only over batch tiles (parallel across TCs on v7x).
    tb = min(tile_b, B)
    Bp = ((B + tb - 1) // tb) * tb
    if Bp != B:
        rev_emb = jnp.pad(rev_emb, ((0, Bp - B), (0, 0), (0, 0), (0, 0)))
        mvec = jnp.pad(mvec, ((0, Bp - B), (0, 0)))

    id_num = mvec.shape[1]
    h1 = p["w1"].shape[1]
    h2 = p["w2"].shape[1]

    out = pl.pallas_call(
        functools.partial(hdrl_fused_kernel, l_out=l_out, f_orig=Fn),
        grid=(Bp // tb,),
        in_specs=[
            pl.BlockSpec((tb, id_num), lambda i: (i, 0)),
            pl.BlockSpec((tb, M, Lp, D), lambda i: (i, 0, 0, 0)),
            pl.BlockSpec((id_num, h1), lambda i: (0, 0)),
            pl.BlockSpec((1, h1), lambda i: (0, 0)),
            pl.BlockSpec((h1, h2), lambda i: (0, 0)),
            pl.BlockSpec((1, h2), lambda i: (0, 0)),
            pl.BlockSpec((h2, Fp), lambda i: (0, 0)),
            pl.BlockSpec((1, Fp), lambda i: (0, 0)),
            pl.BlockSpec((1, Fp), lambda i: (0, 0)),
            pl.BlockSpec((1, Fp), lambda i: (0, 0)),
            pl.BlockSpec((k * D, Fp), lambda i: (0, 0)),
            pl.BlockSpec((1, Fp), lambda i: (0, 0)),
            pl.BlockSpec((1, Fp), lambda i: (0, 0)),
        ],
        out_specs=pl.BlockSpec((tb, Fp), lambda i: (i, 0)),
        out_shape=jax.ShapeDtypeStruct((Bp, Fp), jnp.float32),
        compiler_params=pltpu.CompilerParams(
            dimension_semantics=("parallel",)),
    )(mvec, rev_emb, p["w1"], p["b1"], p["w2"], p["b2"],
      w3p, b3p, gp, betap, cw, cb, sq)
    return out[:B, :Fn]


# ----------------------------------------------------------------------------
# Pure-JAX f32 reference (mirrors the PyTorch forward) for correctness check
# ----------------------------------------------------------------------------
def hdrl_ref(review, index, word_embs, id_embedding, p, conv_w, conv_b,
             s_query_v, k, max_num, review_len):
    B = review.shape[0]
    rev = jnp.take(word_embs, review.reshape(-1, review_len), axis=0)
    mvec = jnp.take(id_embedding, index, axis=0)
    h = jax.nn.relu(mvec @ p["w1"] + p["b1"])
    h = jax.nn.relu(h @ p["w2"] + p["b2"])
    y = h @ p["w3"] + p["b3"]
    mu = y.mean(-1, keepdims=True)
    var = ((y - mu) ** 2).mean(-1, keepdims=True)
    Mv = (y - mu) / jnp.sqrt(var + 1e-5) * p["g"] + p["beta"]
    pad = k // 2
    xp = jnp.pad(rev, ((0, 0), (pad, pad), (0, 0)))
    L_out = xp.shape[1] - k + 1
    conv = jnp.zeros((rev.shape[0], L_out, conv_w.shape[-1]), jnp.float32) + conv_b
    for kk in range(k):
        conv = conv + jnp.einsum("nld,df->nlf", xp[:, kk:kk + L_out, :], conv_w[kk])
    r_fea = jax.nn.relu(conv).max(axis=1).reshape(B, max_num, -1)
    sq = s_query_v + Mv
    aw = jnp.einsum("bmf,bf->bm", r_fea, sq)
    score = jax.nn.softmax(aw, axis=-1)[:, :, None]
    rsum = (jax.nn.relu(r_fea) * score).sum(1)
    return rsum + Mv


if __name__ == "__main__":
    # Small, module-consistent shapes
    B, max_num, review_len = 2, 4, 8
    vocab_size, word_dim = 50, 32
    user_num, item_num = 6, 64          # id_num = item_num (uori='user')
    r_filters_num, kernel_size = 32, 3

    key = jax.random.PRNGKey(0)
    keys = jax.random.split(key, 12)

    # deterministic synthetic parameters (shapes from __init__; no checkpoint load)
    word_embs = 0.1 * jax.random.normal(keys[0], (vocab_size, word_dim), jnp.float32)
    id_embedding = 0.1 * jax.random.normal(keys[1], (user_num, item_num), jnp.float32)

    h1, h2 = item_num // 2, item_num // 4
    mlp_params = {
        "w1": jax.random.normal(keys[2], (item_num, h1), jnp.float32) / jnp.sqrt(item_num),
        "b1": jnp.full((1, h1), 0.1, jnp.float32),
        "w2": jax.random.normal(keys[3], (h1, h2), jnp.float32) / jnp.sqrt(h1),
        "b2": jnp.full((1, h2), 0.1, jnp.float32),
        "w3": jax.random.normal(keys[4], (h2, r_filters_num), jnp.float32) / jnp.sqrt(h2),
        "b3": jnp.full((1, r_filters_num), 0.1, jnp.float32),
        "g": jnp.ones((1, r_filters_num), jnp.float32),
        "beta": jnp.zeros((1, r_filters_num), jnp.float32),
    }
    # Conv2d weight (F,1,k,word_dim) stored as (k, word_dim, F) for channels-last matmul
    conv_w = 0.05 * jax.random.normal(keys[5], (kernel_size, word_dim, r_filters_num),
                                      jnp.float32)
    conv_b = jax.random.uniform(keys[6], (1, r_filters_num), jnp.float32, -0.1, 0.1)
    s_query_v = 0.1 * jax.random.normal(keys[7], (1, r_filters_num), jnp.float32)
    # w_query_v exists in the module but is unused on the pooling='MAX' path.

    review = jax.random.randint(keys[8], (B, max_num, review_len), 0, vocab_size)
    index = jax.random.randint(keys[9], (B,), 0, user_num)

    out = hdrl_forward(review, index, word_embs, id_embedding, mlp_params,
                       conv_w, conv_b, s_query_v, kernel_size, max_num, review_len)
    jax.block_until_ready(out)

    ref = hdrl_ref(review, index, word_embs, id_embedding, mlp_params,
                   conv_w, conv_b, s_query_v, kernel_size, max_num, review_len)
    assert out.shape == (B, r_filters_num)
    # tolerance accounts for bf16 matmul operands (f32 accumulation)
    assert jnp.allclose(out, ref, atol=5e-3, rtol=5e-3), "mismatch vs reference"
    print("KERNEL_OK")
</pallas_src>

<mosaic_0001>
module attributes {stable_mosaic.version = 11 : i64} {
  func.func @hdrl_fused_kernel(%arg0: i32, %arg1: memref<2x64xf32, #tpu.memory_space<vmem>>, %arg2: memref<2x4x16x32xbf16, #tpu.memory_space<vmem>>, %arg3: memref<64x32xf32, #tpu.memory_space<vmem>>, %arg4: memref<1x32xf32, #tpu.memory_space<vmem>>, %arg5: memref<32x16xf32, #tpu.memory_space<vmem>>, %arg6: memref<1x16xf32, #tpu.memory_space<vmem>>, %arg7: memref<16x128xf32, #tpu.memory_space<vmem>>, %arg8: memref<1x128xf32, #tpu.memory_space<vmem>>, %arg9: memref<1x128xf32, #tpu.memory_space<vmem>>, %arg10: memref<1x128xf32, #tpu.memory_space<vmem>>, %arg11: memref<96x128xbf16, #tpu.memory_space<vmem>>, %arg12: memref<1x128xf32, #tpu.memory_space<vmem>>, %arg13: memref<1x128xf32, #tpu.memory_space<vmem>>, %arg14: memref<2x128xf32, #tpu.memory_space<vmem>>) attributes {dimension_semantics = [#tpu.dimension_semantics<parallel>], iteration_bounds = array<i64: 1>, scalar_prefetch = 0 : i64, scratch_operands = 0 : i64, tpu.core_type = #tpu.core_type<tc>, window_params = [{transform_indices = @transform_0, window_bounds = array<i64: 2, 64>}, {transform_indices = @transform_1, window_bounds = array<i64: 2, 4, 16, 32>}, {pipeline_mode = #tpu.pipeline_mode<synchronous>, transform_indices = @transform_2, window_bounds = array<i64: 64, 32>}, {pipeline_mode = #tpu.pipeline_mode<synchronous>, transform_indices = @transform_3, window_bounds = array<i64: 1, 32>}, {pipeline_mode = #tpu.pipeline_mode<synchronous>, transform_indices = @transform_4, window_bounds = array<i64: 32, 16>}, {pipeline_mode = #tpu.pipeline_mode<synchronous>, transform_indices = @transform_5, window_bounds = array<i64: 1, 16>}, {pipeline_mode = #tpu.pipeline_mode<synchronous>, transform_indices = @transform_6, window_bounds = array<i64: 16, 128>}, {pipeline_mode = #tpu.pipeline_mode<synchronous>, transform_indices = @transform_7, window_bounds = array<i64: 1, 128>}, {pipeline_mode = #tpu.pipeline_mode<synchronous>, transform_indices = @transform_8, window_bounds = array<i64: 1, 128>}, {pipeline_mode = #tpu.pipeline_mode<synchronous>, transform_indices = @transform_9, window_bounds = array<i64: 1, 128>}, {pipeline_mode = #tpu.pipeline_mode<synchronous>, transform_indices = @transform_10, window_bounds = array<i64: 96, 128>}, {pipeline_mode = #tpu.pipeline_mode<synchronous>, transform_indices = @transform_11, window_bounds = array<i64: 1, 128>}, {pipeline_mode = #tpu.pipeline_mode<synchronous>, transform_indices = @transform_12, window_bounds = array<i64: 1, 128>}, {transform_indices = @transform_13, window_bounds = array<i64: 2, 128>}]} {
    %c0 = arith.constant 0 : index
    %c0_0 = arith.constant 0 : index
    %0 = vector.load %arg1[%c0, %c0_0] : memref<2x64xf32, #tpu.memory_space<vmem>>, vector<2x64xf32>
    %c0_1 = arith.constant 0 : index
    %c0_2 = arith.constant 0 : index
    %1 = vector.load %arg3[%c0_1, %c0_2] : memref<64x32xf32, #tpu.memory_space<vmem>>, vector<64x32xf32>
    %cst = arith.constant dense<0.000000e+00> : vector<2x32xf32>
    %2 = tpu.matmul %0, %1, %cst {dimension_numbers = #tpu.dot_dimension_numbers<[1], [0], [0], [1], [0, 0, 1, 1], [], []>} : vector<2x64xf32>, vector<64x32xf32>, vector<2x32xf32> -> vector<2x32xf32>
    %c0_3 = arith.constant 0 : index
    %c0_4 = arith.constant 0 : index
    %3 = vector.load %arg4[%c0_3, %c0_4] : memref<1x32xf32, #tpu.memory_space<vmem>>, vector<1x32xf32>
    %4 = vector.broadcast %3 : vector<1x32xf32> to vector<2x32xf32>
    %5 = arith.addf %2, %4 : vector<2x32xf32>
    %cst_5 = arith.constant 0.000000e+00 : f32
    %6 = vector.broadcast %cst_5 : f32 to vector<2x32xf32>
    %7 = arith.maximumf %5, %6 : vector<2x32xf32>
    %c0_6 = arith.constant 0 : index
    %c0_7 = arith.constant 0 : index
    %8 = vector.load %arg5[%c0_6, %c0_7] : memref<32x16xf32, #tpu.memory_space<vmem>>, vector<32x16xf32>
    %cst_8 = arith.constant dense<0.000000e+00> : vector<2x16xf32>
    %9 = tpu.matmul %7, %8, %cst_8 {dimension_numbers = #tpu.dot_dimension_numbers<[1], [0], [0], [1], [0, 0, 1, 1], [], []>} : vector<2x32xf32>, vector<32x16xf32>, vector<2x16xf32> -> vector<2x16xf32>
    %c0_9 = arith.constant 0 : index
    %c0_10 = arith.constant 0 : index
    %10 = vector.load %arg6[%c0_9, %c0_10] : memref<1x16xf32, #tpu.memory_space<vmem>>, vector<1x16xf32>
    %11 = vector.broadcast %10 : vector<1x16xf32> to vector<2x16xf32>
    %12 = arith.addf %9, %11 : vector<2x16xf32>
    %cst_11 = arith.constant 0.000000e+00 : f32
    %13 = vector.broadcast %cst_11 : f32 to vector<2x16xf32>
    %14 = arith.maximumf %12, %13 : vector<2x16xf32>
    %c0_12 = arith.constant 0 : index
    %c0_13 = arith.constant 0 : index
    %15 = vector.load %arg7[%c0_12, %c0_13] : memref<16x128xf32, #tpu.memory_space<vmem>>, vector<16x128xf32>
    %cst_14 = arith.constant dense<0.000000e+00> : vector<2x128xf32>
    %16 = tpu.matmul %14, %15, %cst_14 {dimension_numbers = #tpu.dot_dimension_numbers<[1], [0], [0], [1], [0, 0, 1, 1], [], []>} : vector<2x16xf32>, vector<16x128xf32>, vector<2x128xf32> -> vector<2x128xf32>
    %c0_15 = arith.constant 0 : index
    %c0_16 = arith.constant 0 : index
    %17 = vector.load %arg8[%c0_15, %c0_16] : memref<1x128xf32, #tpu.memory_space<vmem>>, vector<1x128xf32>
    %18 = vector.broadcast %17 : vector<1x128xf32> to vector<2x128xf32>
    %19 = arith.addf %16, %18 : vector<2x128xf32>
    %20 = tpu.iota {dimensions = array<i32: 1>} : vector<2x128xi32>
    %c32_i32 = arith.constant 32 : i32
    %21 = vector.broadcast %c32_i32 : i32 to vector<2x128xi32>
    %22 = arith.cmpi slt, %20, %21 : vector<2x128xi32>
    %cst_17 = arith.constant dense<0.000000e+00> : vector<2xf32>
    %23 = vector.multi_reduction <add>, %19, %cst_17 [1] : vector<2x128xf32> to vector<2xf32>
    %24 = vector.shape_cast %23 : vector<2xf32> to vector<2x1xf32>
    %cst_18 = arith.constant 3.200000e+01 : f32
    %25 = vector.broadcast %cst_18 : f32 to vector<2x1xf32>
    %26 = arith.divf %24, %25 : vector<2x1xf32>
    %27 = vector.broadcast %26 : vector<2x1xf32> to vector<2x128xf32>
    %28 = arith.subf %19, %27 : vector<2x128xf32>
    %cst_19 = arith.constant 0.000000e+00 : f32
    %29 = vector.broadcast %cst_19 : f32 to vector<2x128xf32>
    %30 = arith.select %22, %28, %29 : vector<2x128xi1>, vector<2x128xf32>
    %31 = arith.mulf %30, %30 : vector<2x128xf32>
    %cst_20 = arith.constant dense<0.000000e+00> : vector<2xf32>
    %32 = vector.multi_reduction <add>, %31, %cst_20 [1] : vector<2x128xf32> to vector<2xf32>
    %33 = vector.shape_cast %32 : vector<2xf32> to vector<2x1xf32>
    %cst_21 = arith.constant 3.200000e+01 : f32
    %34 = vector.broadcast %cst_21 : f32 to vector<2x1xf32>
    %35 = arith.divf %33, %34 : vector<2x1xf32>
    %36 = vector.broadcast %26 : vector<2x1xf32> to vector<2x128xf32>
    %37 = arith.subf %19, %36 : vector<2x128xf32>
    %cst_22 = arith.constant 9.99999974E-6 : f32
    %38 = vector.broadcast %cst_22 : f32 to vector<2x1xf32>
    %39 = arith.addf %35, %38 : vector<2x1xf32>
    %40 = math.rsqrt %39 : vector<2x1xf32>
    %41 = vector.broadcast %40 : vector<2x1xf32> to vector<2x128xf32>
    %42 = arith.mulf %37, %41 : vector<2x128xf32>
    %c0_23 = arith.constant 0 : index
    %c0_24 = arith.constant 0 : index
    %43 = vector.load %arg9[%c0_23, %c0_24] : memref<1x128xf32, #tpu.memory_space<vmem>>, vector<1x128xf32>
    %44 = vector.broadcast %43 : vector<1x128xf32> to vector<2x128xf32>
    %45 = arith.mulf %42, %44 : vector<2x128xf32>
    %c0_25 = arith.constant 0 : index
    %c0_26 = arith.constant 0 : index
    %46 = vector.load %arg10[%c0_25, %c0_26] : memref<1x128xf32, #tpu.memory_space<vmem>>, vector<1x128xf32>
    %47 = vector.broadcast %46 : vector<1x128xf32> to vector<2x128xf32>
    %48 = arith.addf %45, %47 : vector<2x128xf32>
    %c0_27 = arith.constant 0 : index
    %c0_28 = arith.constant 0 : index
    %c0_29 = arith.constant 0 : index
    %c0_30 = arith.constant 0 : index
    %49 = vector.load %arg2[%c0_27, %c0_28, %c0_29, %c0_30] : memref<2x4x16x32xbf16, #tpu.memory_space<vmem>>, vector<2x4x16x32xbf16>
    %50 = vector.extract_strided_slice %49 {offsets = [0, 0, 0, 0], sizes = [2, 4, 8, 32], strides = [1, 1, 1, 1]} : vector<2x4x16x32xbf16> to vector<2x4x8x32xbf16>
    %51 = vector.shape_cast %50 : vector<2x4x8x32xbf16> to vector<64x32xbf16>
    %52 = vector.extract_strided_slice %49 {offsets = [0, 0, 1, 0], sizes = [2, 4, 8, 32], strides = [1, 1, 1, 1]} : vector<2x4x16x32xbf16> to vector<2x4x8x32xbf16>
    %53 = vector.shape_cast %52 : vector<2x4x8x32xbf16> to vector<64x32xbf16>
    %54 = vector.extract_strided_slice %49 {offsets = [0, 0, 2, 0], sizes = [2, 4, 8, 32], strides = [1, 1, 1, 1]} : vector<2x4x16x32xbf16> to vector<2x4x8x32xbf16>
    %55 = vector.shape_cast %54 : vector<2x4x8x32xbf16> to vector<64x32xbf16>
    %56 = tpu.concatenate %51, %53, %55 in 1 : vector<64x32xbf16>, vector<64x32xbf16>, vector<64x32xbf16> -> vector<64x96xbf16>
    %c0_31 = arith.constant 0 : index
    %c0_32 = arith.constant 0 : index
    %57 = vector.load %arg11[%c0_31, %c0_32] : memref<96x128xbf16, #tpu.memory_space<vmem>>, vector<96x128xbf16>
    %cst_33 = arith.constant dense<0.000000e+00> : vector<64x128xf32>
    %58 = tpu.matmul %56, %57, %cst_33 {dimension_numbers = #tpu.dot_dimension_numbers<[1], [0], [0], [1], [0, 0, 1, 1], [], []>} : vector<64x96xbf16>, vector<96x128xbf16>, vector<64x128xf32> -> vector<64x128xf32>
    %c0_34 = arith.constant 0 : index
    %c0_35 = arith.constant 0 : index
    %59 = vector.load %arg12[%c0_34, %c0_35] : memref<1x128xf32, #tpu.memory_space<vmem>>, vector<1x128xf32>
    %60 = vector.broadcast %59 : vector<1x128xf32> to vector<64x128xf32>
    %61 = arith.addf %58, %60 : vector<64x128xf32>
    %cst_36 = arith.constant 0.000000e+00 : f32
    %62 = vector.broadcast %cst_36 : f32 to vector<64x128xf32>
    %63 = arith.maximumf %61, %62 : vector<64x128xf32>
    %64 = vector.shape_cast %63 : vector<64x128xf32> to vector<8x8x128xf32>
    %cst_37 = arith.constant dense<0xFF800000> : vector<8x128xf32>
    %65 = vector.multi_reduction <maximumf>, %64, %cst_37 [1] : vector<8x8x128xf32> to vector<8x128xf32>
    %66 = vector.shape_cast %65 : vector<8x128xf32> to vector<2x4x128xf32>
    %c0_38 = arith.constant 0 : index
    %c0_39 = arith.constant 0 : index
    %67 = vector.load %arg13[%c0_38, %c0_39] : memref<1x128xf32, #tpu.memory_space<vmem>>, vector<1x128xf32>
    %68 = vector.broadcast %67 : vector<1x128xf32> to vector<2x128xf32>
    %69 = arith.addf %68, %48 : vector<2x128xf32>
    %70 = vector.shape_cast %69 : vector<2x128xf32> to vector<2x1x128xf32>
    %71 = vector.broadcast %70 : vector<2x1x128xf32> to vector<2x4x128xf32>
    %72 = arith.mulf %66, %71 : vector<2x4x128xf32>
    %cst_40 = arith.constant dense<0.000000e+00> : vector<2x4xf32>
    %73 = vector.multi_reduction <add>, %72, %cst_40 [2] : vector<2x4x128xf32> to vector<2x4xf32>
    %cst_41 = arith.constant dense<0xFF800000> : vector<2xf32>
    %74 = vector.multi_reduction <maximumf>, %73, %cst_41 [1] : vector<2x4xf32> to vector<2xf32>
    %75 = vector.shape_cast %74 : vector<2xf32> to vector<2x1xf32>
    %76 = vector.broadcast %75 : vector<2x1xf32> to vector<2x4xf32>
    %77 = arith.subf %73, %76 : vector<2x4xf32>
    %78 = math.exp %77 : vector<2x4xf32>
    %cst_42 = arith.constant dense<0.000000e+00> : vector<2xf32>
    %79 = vector.multi_reduction <add>, %78, %cst_42 [1] : vector<2x4xf32> to vector<2xf32>
    %80 = vector.shape_cast %79 : vector<2xf32> to vector<2x1xf32>
    %81 = tpu.reciprocal %80 {approx = true} : vector<2x1xf32> -> vector<2x1xf32>
    %82 = vector.broadcast %81 : vector<2x1xf32> to vector<2x4xf32>
    %83 = arith.mulf %78, %82 : vector<2x4xf32>
    %84 = vector.shape_cast %83 : vector<2x4xf32> to vector<2x4x1xf32>
    %85 = vector.broadcast %84 : vector<2x4x1xf32> to vector<2x4x128xf32>
    %86 = arith.mulf %66, %85 : vector<2x4x128xf32>
    %cst_43 = arith.constant dense<0.000000e+00> : vector<2x128xf32>
    %87 = vector.multi_reduction <add>, %86, %cst_43 [1] : vector<2x4x128xf32> to vector<2x128xf32>
    %88 = arith.addf %87, %48 : vector<2x128xf32>
    %c0_44 = arith.constant 0 : index
    %c0_45 = arith.constant 0 : index
    %89 = vector.load %arg14[%c0_44, %c0_45] : memref<2x128xf32, #tpu.memory_space<vmem>>, vector<2x128xf32>
    tpu.vector_store %arg14[%c0_44, %c0_45], %88 {strides = array<i32>} : memref<2x128xf32, #tpu.memory_space<vmem>>, vector<2x128xf32>,
    return
  }
  func.func @transform_0(%arg0: i32) -> (i32, i32) {
    %c0_i32 = arith.constant 0 : i32
    %c0_i32_0 = arith.constant 0 : i32
    return %arg0, %c0_i32 : i32, i32
  }
  func.func @transform_1(%arg0: i32) -> (i32, i32, i32, i32) {
    %c0_i32 = arith.constant 0 : i32
    %c0_i32_0 = arith.constant 0 : i32
    %c0_i32_1 = arith.constant 0 : i32
    %c0_i32_2 = arith.constant 0 : i32
    return %arg0, %c0_i32, %c0_i32_0, %c0_i32_1 : i32, i32, i32, i32
  }
  func.func @transform_2(%arg0: i32) -> (i32, i32) {
    %c0_i32 = arith.constant 0 : i32
    %c0_i32_0 = arith.constant 0 : i32
    %c0_i32_1 = arith.constant 0 : i32
    return %c0_i32, %c0_i32_0 : i32, i32
  }
  func.func @transform_3(%arg0: i32) -> (i32, i32) {
    %c0_i32 = arith.constant 0 : i32
    %c0_i32_0 = arith.constant 0 : i32
    %c0_i32_1 = arith.constant 0 : i32
    return %c0_i32, %c0_i32_0 : i32, i32
  }
  func.func @transform_4(%arg0: i32) -> (i32, i32) {
    %c0_i32 = arith.constant 0 : i32
    %c0_i32_0 = arith.constant 0 : i32
    %c0_i32_1 = arith.constant 0 : i32
    return %c0_i32, %c0_i32_0 : i32, i32
  }
  func.func @transform_5(%arg0: i32) -> (i32, i32) {
    %c0_i32 = arith.constant 0 : i32
    %c0_i32_0 = arith.constant 0 : i32
    %c0_i32_1 = arith.constant 0 : i32
    return %c0_i32, %c0_i32_0 : i32, i32
  }
  func.func @transform_6(%arg0: i32) -> (i32, i32) {
    %c0_i32 = arith.constant 0 : i32
    %c0_i32_0 = arith.constant 0 : i32
    %c0_i32_1 = arith.constant 0 : i32
    return %c0_i32, %c0_i32_0 : i32, i32
  }
  func.func @transform_7(%arg0: i32) -> (i32, i32) {
    %c0_i32 = arith.constant 0 : i32
    %c0_i32_0 = arith.constant 0 : i32
    %c0_i32_1 = arith.constant 0 : i32
    return %c0_i32, %c0_i32_0 : i32, i32
  }
  func.func @transform_8(%arg0: i32) -> (i32, i32) {
    %c0_i32 = arith.constant 0 : i32
    %c0_i32_0 = arith.constant 0 : i32
    %c0_i32_1 = arith.constant 0 : i32
    return %c0_i32, %c0_i32_0 : i32, i32
  }
  func.func @transform_9(%arg0: i32) -> (i32, i32) {
    %c0_i32 = arith.constant 0 : i32
    %c0_i32_0 = arith.constant 0 : i32
    %c0_i32_1 = arith.constant 0 : i32
    return %c0_i32, %c0_i32_0 : i32, i32
  }
  func.func @transform_10(%arg0: i32) -> (i32, i32) {
    %c0_i32 = arith.constant 0 : i32
    %c0_i32_0 = arith.constant 0 : i32
    %c0_i32_1 = arith.constant 0 : i32
    return %c0_i32, %c0_i32_0 : i32, i32
  }
  func.func @transform_11(%arg0: i32) -> (i32, i32) {
    %c0_i32 = arith.constant 0 : i32
    %c0_i32_0 = arith.constant 0 : i32
    %c0_i32_1 = arith.constant 0 : i32
    return %c0_i32, %c0_i32_0 : i32, i32
  }
  func.func @transform_12(%arg0: i32) -> (i32, i32) {
    %c0_i32 = arith.constant 0 : i32
    %c0_i32_0 = arith.constant 0 : i32
    %c0_i32_1 = arith.constant 0 : i32
    return %c0_i32, %c0_i32_0 : i32, i32
  }
  func.func @transform_13(%arg0: i32) -> (i32, i32) {
    %c0_i32 = arith.constant 0 : i32
    %c0_i32_0 = arith.constant 0 : i32
    return %arg0, %c0_i32 : i32, i32
  }
}

</mosaic_0001>

<bundles_post_ra>
// kernel: tpu_custom_call.1
= control target key start
LH: loop header
LB: loop body
LE: loop exit
PB: predicated region body
PF: predicated region fallthrough
CT: control target
= control target key end

     0   :  { %18 = vsyncpa [#allocation3], 0  ;;  %s1731_s0 = inlined_call_operand.vmem [shape: f32[2,64], index: 0, kind: input, shape index: {}]   ;;  %s1732_s1 = inlined_call_operand.vmem [shape: bf16[2,4,16,32], index: 1, kind: input, shape index: {}]   ;;  %s1733_s2 = inlined_call_operand.vmem [shape: f32[64,32], index: 2, kind: input, shape index: {}]   ;;  %s1734_s3 = inlined_call_operand.hbm [shape: f32[1,32], index: 3, kind: input, shape index: {}]   ;;  %s1735_s4 = inlined_call_operand.vmem [shape: f32[32,16], index: 4, kind: input, shape index: {}]   ;;  %s1736_s5 = inlined_call_operand.hbm [shape: f32[1,16], index: 5, kind: input, shape index: {}]   ;;  %s1737_s6 = inlined_call_operand.vmem [shape: f32[16,128], index: 6, kind: input, shape index: {}]   ;;  %s1738_s7 = inlined_call_operand.vmem [shape: f32[1,128], index: 7, kind: input, shape index: {}]   ;;  %s1739_s8 = inlined_call_operand.vmem [shape: f32[1,128], index: 8, kind: input, shape index: {}]   ;;  %s1740_s9 = inlined_call_operand.vmem [shape: f32[1,128], index: 9, kind: input, shape index: {}]   ;;  %s1741_s10 = inlined_call_operand.vmem [shape: bf16[96,128], index: 10, kind: input, shape index: {}]   ;;  %s1742_s11 = inlined_call_operand.vmem [shape: f32[1,128], index: 11, kind: input, shape index: {}]   ;;  %s1743_s12 = inlined_call_operand.vmem [shape: f32[1,128], index: 12, kind: input, shape index: {}]   ;;  %s1744_s13 = inlined_call_operand.hbm [shape: f32[2,128], index: 13, kind: output, shape index: {}]  }
   0x1   :  { %19 = vsyncpa [#allocation6], 0 }
   0x2   :  { %20 = vsyncpa [#allocation4], 0  ;;  %s1294_s25 = smov [#allocation2]   ;;  %s1295_s27 = smov [#allocation5]  }
   0x3   :  { %s33_s26 = sshll.u32 %s1294_s25, 4  ;;  %s45_s28 = sshll.u32 %s1295_s27, 4  ;;  %s34_s26 = int_to_ptr.vmem [resolvable:$true] %s33_s26  ;;  %s46_s28 = int_to_ptr.vmem [resolvable:$true] %s45_s28 }
   0x4   :  { %s1222_s14 = scalar_lea.hbm %s1734_s3, 16 }
   0x5   :  { %p1223_p0 = scmp.ne.s32.totalorder %s1734_s3, %s1222_s14  ;;  %p1226_p1 = scmp.lt.u32.totalorder %s1222_s14, %s1734_s3 }
   0x7   :  { %p1228_p2 = pnand %p1226_p1, %p1223_p0 }
   0x9   :  { %1231 = shalt.err (!%p1228_p2)
}
   0xa   :  { %s1232_s19 = scalar_lea.vmem %s34_s26, 16  ;;  %s1236_s20 = scalar_lea.vmem %s34_s26, 32 }
   0xb   :  { %p1233_p3 = scmp.ne.s32.totalorder %s34_s26, %s1232_s19  ;;  %p1237_p4 = scmp.lt.s32.totalorder %s34_s26, %s34_s26 }
   0xc   :  { %p1238_p5 = scmp.lt.s32.totalorder %s1236_s20, %s1232_s19 }
   0xe   :  { %p1239_p6 = por %p1238_p5, %p1237_p4 }
  0x10   :  { %p1240_p7 = pnand %p1239_p6, %p1233_p3 }
  0x12   :  { %1243 = shalt.err (!%p1240_p7)
}
  0x13   :  { %36 = dma.hbm_to_vmem [thread:$0]  %s1734_s3, 16, %s34_s26, [#allocation3]  }
  0x14   :  { %s1244_s25 = scalar_lea.hbm %s1736_s5, 16 }
  0x15   :  { %p1245_p8 = scmp.ne.s32.totalorder %s1736_s5, %s1244_s25  ;;  %p1248_p9 = scmp.lt.u32.totalorder %s1244_s25, %s1736_s5 }
  0x17   :  { %p1250_p10 = pnand %p1248_p9, %p1245_p8 }
  0x19   :  { %1253 = shalt.err (!%p1250_p10)
}
  0x1a   :  { %s1254_s15 = scalar_lea.vmem %s46_s28, 16  ;;  %s1258_s16 = scalar_lea.vmem %s46_s28, 32 }
  0x1b   :  { %p1255_p11 = scmp.ne.s32.totalorder %s46_s28, %s1254_s15  ;;  %p1259_p12 = scmp.lt.s32.totalorder %s46_s28, %s46_s28 }
  0x1c   :  { %p1260_p13 = scmp.lt.s32.totalorder %s1258_s16, %s1254_s15 }
  0x1e   :  { %p1261_p0 = por %p1260_p13, %p1259_p12 }
  0x20   :  { %p1262_p1 = pnand %p1261_p0, %p1255_p11 }
  0x22   :  { %1265 = shalt.err (!%p1262_p1)
}
  0x23   :  { %48 = dma.hbm_to_vmem [thread:$0]  %s1736_s5, 16, %s46_s28, [#allocation6]  }
  0x24   :  { %1288 = dma.done.wait [#allocation3], 16  }
  0x25   :  { %1289 = vsyncadd [#allocation3], 4294967280 }
  0x26   :  { %1290 = dma.done.wait [#allocation6], 16  }
  0x27   :  { %1291 = vsyncadd [#allocation6], 4294967280  ;;  %v1296_v0 = vmov 0.0|0.0   ;;  %vm1297_vm0 = vmmov 0   ;;  %v1298_v1 = vmov 0.0   ;;  %v71_v2 = vld [vmem:[%s1733_s2] sm:$0xff] }
  0x28   :  { %1171 = vmatprep.subr.bf16.mxu0 %v1296_v0  ;;  %1130 = vmatprep.mubr.msk.f32.mxu0 %vm1297_vm0, %v1298_v1  ;;  %v72_v3 = vld [vmem:[%s1733_s2 + $0x8] sm:$0xff]  ;;  %v73_v4 = vld [vmem:[%s1733_s2 + $0x10] sm:$0xff]  ;;  %v74_v6 = vld [vmem:[%s1733_s2 + $0x18] sm:$0xff]  ;;  %vm86_vm1 = vcmask 523264   ;;  %vm172_vm2 = vcmask 261120   ;;  %vm512_vm5 = vcmask 1042432  }
  0x29   :  { %v1172_v5 = vpack.c.bf16 %v72_v3, %v71_v2  ;;  %v1175_v7 = vpack.c.bf16 %v74_v6, %v73_v4  ;;  %v75_v8 = vld [vmem:[%s1733_s2 + $0x20] sm:$0xff]  ;;  %v76_v9 = vld [vmem:[%s1733_s2 + $0x28] sm:$0xff]  ;;  %v77_v11 = vld [vmem:[%s1733_s2 + $0x30] sm:$0xff]  ;;  %vm381_vm3 = vsmask.f32 3328  ;;  %vm513_vm6 = vcmask 1046532  }
  0x2a   :  { %v1178_v10 = vpack.c.bf16 %v76_v9, %v75_v8  ;;  %v78_v12 = vld [vmem:[%s1733_s2 + $0x38] sm:$0xff]  ;;  %v161_v14 = vld [vmem:[%s1735_s4] sm:$0xff]  ;;  %v162_v15 = vld [vmem:[%s1735_s4 + $0x8] sm:$0xff]  ;;  %vm382_vm4 = vsmask.f32 7440  ;;  %s1299_s5 = smov 64  }
  0x2b   :  { %1173 = vmatpush3.bf16.msra.mxu0 %v1172_v5  ;;  %v1181_v13 = vpack.c.bf16 %v78_v12, %v77_v11  ;;  %v70_v16 = vld [vmem:[%s1731_s0] sm:$0x3]  ;;  %v1184_v17 = vpack.c.bf16 %v162_v15, %v161_v14  ;;  %v163_v18 = vld [vmem:[%s1735_s4 + $0x10] sm:$0xff]  ;;  %v164_v19 = vld [vmem:[%s1735_s4 + $0x18] sm:$0xff]  ;;  %s1300_s25 = smov 32   ;;  %vm256_vm9 = vcmask 130048  }
  0x2c   :  { %1174 = vmatprep.subr.bf16.mxu0 %v1296_v0  ;;  %v1187_v20 = vpack.c.bf16 %v164_v19, %v163_v18  ;;  %v1047_v21 = vld [vmem:[#allocation2] ss:$0 sm:$0xff]  ;;  %v248_v27 = vld [vmem:[%s1737_s6 + $0x8] sm:$0xff]  ;;  %v366_v30 = vld [vmem:[%s1732_s1 + $0x4] sm:$0xf]  ;;  %vm674_vm10 = vcmask 785408  }
  0x2d   :  { %v247_v26 = vld [vmem:[%s1737_s6] sm:$0xff]  ;;  %v1459_v31 = vld [vmem:[%s1732_s1 + $0x8] sm:$0xf]  ;;  %v368_v32 = vld [vmem:[%s1732_s1 + $0xc] sm:$0xf]  ;;  %v394_v35 = vshll.u32 %v366_v30, 16 }
  0x2e   :  { %v1190_v28 = vpack.c.bf16 %v248_v27, %v247_v26  ;;  %v1451_v29 = vld [vmem:[%s1732_s1] sm:$0xf]  ;;  %v399_v36 = vshrl.u32 %v1459_v31, 16  ;;  %v402_v37 = vshll.u32 %v1459_v31, 16  ;;  %v408_v38 = vshll.u32 %v368_v32, 16  ;;  %vm1473_vm7 = vmor %vm512_vm5, %vm513_vm6 }
  0x2f   :  { %1176 = vmatpush3.bf16.msra.mxu0 %v1175_v7  ;;  %v385_v33 = vshrl.u32 %v1451_v29, 16  ;;  %v388_v34 = vshll.u32 %v1451_v29, 16  ;;  %v1471_v39 = vld [vmem:[%s1732_s1 + $0x10] sm:$0xf]  ;;  %v396_v42 = vrot.slane %v394_v35, 5  ;;  %v1055_v48 = vrot.slane %v1451_v29, 9  ;;  %vm1490_vm8 = vmor %vm381_vm3, %vm382_vm4 }
  0x30   :  { %1177 = vmatprep.subr.bf16.mxu0 %v1296_v0  ;;  %v401_v43 = vrot.slane %v399_v36, 4  ;;  %v370_v45 = vld [vmem:[%s1732_s1 + $0x14] sm:$0xf]  ;;  %v404_v46 = vrot.slane %v402_v37, 5  ;;  %v410_v47 = vrot.slane %v408_v38, 5  ;;  %v517_v49 = vrot.slane %v366_v30, 5 }
  0x31   :  { %v387_v40 = vrot.slane %v385_v33, 4  ;;  %v390_v41 = vrot.slane %v388_v34, 5  ;;  %v1484_v50 = vld [vmem:[%s1732_s1 + $0x18] sm:$0xf]  ;;  %v1056_v52 = vrot.slane %v1459_v31, 9  ;;  %v521_v53 = vrot.slane %v368_v32, 5 }
  0x32   :  { %v413_v54 = vshrl.u32 %v1471_v39, 16  ;;  %v405_v56 = vor.u32 %v404_v46, %v401_v43  ;;  %v518_v57 = vsel %vm1473_vm7, %v1055_v48, %v517_v49  ;;  %v372_v58 = vld [vmem:[%s1732_s1 + $0x1c] sm:$0xf]  ;;  %v416_v59 = vshll.u32 %v1471_v39, 16  ;;  %v1509_v9 = vld [vmem:[%s1732_s1 + $0x20] sm:$0xf] }
  0x33   :  { %1179 = vmatpush3.bf16.msra.mxu0 %v1178_v10  ;;  %v391_v51 = vor.u32 %v390_v41, %v387_v40  ;;  %v422_v60 = vshll.u32 %v370_v45, 16  ;;  %v522_v62 = vsel %vm1473_vm7, %v1056_v52, %v521_v53  ;;  %v430_v7 = vshll.u32 %v1484_v50, 16  ;;  %v1518_v14 = vld [vmem:[%s1732_s1 + $0x24] sm:$0xf]  ;;  %v1523_v15 = vld [vmem:[%s1732_s1 + $0x28] sm:$0xf] }
  0x34   :  { %1180 = vmatprep.subr.bf16.mxu0 %v1296_v0  ;;  %v415_v63 = vrot.slane %v413_v54, 4  ;;  %v1071_v2 = vcombine.low %v518_v57, %v522_v62  ;;  %v418_v3 = vrot.slane %v416_v59, 5  ;;  %v436_v8 = vshll.u32 %v372_v58, 16  ;;  %v1539_v30 = vld [vmem:[%s1732_s1 + $0x30] sm:$0xf]  ;;  %v1204_v44 = vld [vmem:[%s1741_s10] sm:$0xff]  }
  0x35   :  { %v392_v61 = vrot.slane %v391_v51, 4  ;;  %v424_v4 = vrot.slane %v422_v60, 5  ;;  %v1057_v12 = vrot.slane %v1471_v39, 9  ;;  %v1058_v19 = vrot.slane %v1484_v50, 9  ;;  %v378_v36 = vld [vmem:[%s1732_s1 + $0x34] sm:$0xf]  ;;  %1151 = vmatprep.subr.bf16.mxu1 %v1204_v44 }
  0x36   :  { %591 = vrot.lane.b32.xlu1 %v1071_v2, %s1299_s5  ;;  %v419_v11 = vor.u32 %v418_v3, %v415_v63  ;;  %v438_v18 = vrot.slane %v436_v8, 5  ;;  %v444_v26 = vshll.u32 %v1509_v9, 16  ;;  %v450_v27 = vshll.u32 %v1518_v14, 16  ;;  %v1552_v46 = vld [vmem:[%s1732_s1 + $0x38] sm:$0xf]  ;;  %1152 = vmatpush3.bf16.msra.mxu1 %v1204_v44 }
  0x37   :  { %1182 = vmatpush3.bf16.msra.mxu0 %v1181_v13  ;;  %v397_v5 = vsel %vm1490_vm8, %v392_v61, %v396_v42  ;;  %v525_v13 = vrot.slane %v370_v45, 5  ;;  %v458_v35 = vshll.u32 %v1523_v15, 16  ;;  %v380_v51 = vld [vmem:[%s1732_s1 + $0x3c] sm:$0xf]  ;;  %v472_v52 = vshll.u32 %v1539_v30, 16 }
  0x38   :  { %1183 = vmatprep.subr.bf16.mxu0 %v1296_v0  ;;  %v446_v40 = vrot.slane %v444_v26, 5  ;;  %v452_v41 = vrot.slane %v450_v27, 5  ;;  %v478_v53 = vshll.u32 %v378_v36, 16  ;;  %v483_v62 = vshrl.u32 %v1552_v46, 16 }
  0x39   :  { %v460_v43 = vrot.slane %v458_v35, 5  ;;  %v474_v60 = vrot.slane %v472_v52, 5  ;;  %v1059_v2 = vrot.slane %v1509_v9, 9  ;;  %v1064_v52 = vcombine.low %v1471_v39, %v1484_v50 }
  0x3a   :  { %1131 = vmatmul.mubr.msk.f32.vlgmr.msra.gmra.mrb[0].mxu0 %vm86_vm1, %v70_v16  ;;  %v480_v61 = vrot.slane %v478_v53, 5  ;;  %v1065_v53 = vcombine.low %v1509_v9, %v1523_v15  ;;  %vm333_vm11 = vcmask 1041408   ;;  %vm862_vm13 = vcmask 1041409  }
  0x3b   :  { %1185 = vmatpush3.bf16.msra.mxu0 %v1184_v17  ;;  %1141 = vmatprep.mubr.msk.f32.mxu0 %vm1297_vm0, %v1298_v1  ;;  %v432_v17 = vrot.slane %v430_v7, 5  ;;  %vm865_vm14 = vcmask 1042434   ;;  %vm868_vm15 = vcmask 1043459  }
  0x3c   :  { %1186 = vmatprep.subr.bf16.mxu0 %v1296_v0 }
  0x3f   :  { %1188 = vmatpush3.bf16.msra.mxu0 %v1187_v20  ;;  %v420_v20 = vrot.slane %v419_v11, 4  ;;  %v1060_v11 = vrot.slane %v1523_v15, 9 }
  0x40   :  { %1189 = vmatprep.subr.bf16.mxu0 %v1296_v0  ;;  %v427_v0 = vshrl.u32 %v1484_v50, 16 }
  0x41   :  { %v425_v32 = vsel %vm1490_vm8, %v420_v20, %v424_v4  ;;  %v541_v20 = vrot.slane %v378_v36, 5 }
  0x42   :  { %v429_v6 = vrot.slane %v427_v0, 4  ;;  %v486_v0 = vshll.u32 %v1552_v46, 16 }
  0x44   :  { %v488_v8 = vrot.slane %v486_v0, 5 }
 0x10d   :  { %v156_v22 = vpop.f32.mrb[0].mxu0 }
 0x10e   :  { %v157_v23 = vadd.f32 %v1047_v21, %v156_v22  ;;  %v1132_v24 = vpop.f32.mrb[1].mxu0  ;;  %v526_v21 = vsel %vm1473_vm7, %v1057_v12, %v525_v13  ;;  %v529_v22 = vrot.slane %v372_v58, 5 }
 0x10f   :  { %v441_v24 = vshrl.u32 %v1509_v9, 16 }
 0x110   :  { %v160_v25 = vmax.f32 %v157_v23, 0.0  ;;  %v376_v23 = vld [vmem:[%s1732_s1 + $0x2c] sm:$0xf]  ;;  %v530_v33 = vsel %vm1473_vm7, %v1058_v19, %v529_v22  ;;  %v1061_v19 = vrot.slane %v1539_v30, 9  ;;  %v545_v22 = vrot.slane %v380_v51, 5 }
 0x111   :  { %v443_v34 = vrot.slane %v441_v24, 4  ;;  %v1072_v38 = vcombine.low %v526_v21, %v530_v33  ;;  %v464_v45 = vshll.u32 %v376_v23, 16  ;;  %v1062_v21 = vrot.slane %v1552_v46, 9 }
 0x112   :  { %1142 = vmatmul.mubr.msk.f32.vlgmr.msra.gmra.mrb[2].mxu0 %vm172_vm2, %v160_v25  ;;  %v433_v25 = vor.u32 %v432_v17, %v429_v6  ;;  %v533_v6 = vrot.slane %v1518_v14, 5  ;;  %v537_v17 = vrot.slane %v376_v23, 5  ;;  %v542_v27 = vsel %vm1473_vm7, %v1061_v19, %v541_v20  ;;  %v1075_v20 = vld [vmem:[%s1742_s11] ss:$0 sm:$0xff] }
 0x113   :  { %1148 = vmatprep.mubr.msk.f32.mxu0 %vm1297_vm0, %v1298_v1  ;;  %1191 = vmatpush3.bf16.msra.mxu0 %v1190_v28  ;;  %v406_v1 = vrot.slane %v405_v56, 4  ;;  %v455_v28 = vshrl.u32 %v1523_v15, 16  ;;  %v447_v49 = vor.u32 %v446_v40, %v443_v34  ;;  %v466_v57 = vrot.slane %v464_v45, 5  ;;  %v1049_v34 = vld [vmem:[#allocation5] ss:$0 sm:$0xff] }
 0x114   :  { %v434_v37 = vrot.slane %v433_v25, 4  ;;  %593 = vrot.lane.b32.xlu1 %v1072_v38, %s1299_s5  ;;  %v538_v14 = vsel %vm1473_vm7, %v1060_v11, %v537_v17  ;;  %v1205_v38 = vld [vmem:[%s1741_s10 + $0x8] sm:$0xff]   ;;  %v1063_v40 = vcombine.low %v1451_v29, %v1459_v31  ;;  %v1207_v29 = vld [vmem:[%s1741_s10 + $0x18] sm:$0xff]   ;;  %vm878_vm0 = vcmask 1043456  }
 0x115   :  { %v411_v10 = vsel %vm1490_vm8, %v406_v1, %v410_v47  ;;  %v457_v42 = vrot.slane %v455_v28, 4  ;;  %v469_v47 = vshrl.u32 %v1539_v30, 16  ;;  %v448_v59 = vrot.slane %v447_v49, 4  ;;  %1153 = vmatprep.subr.bf16.mxu1 %v1205_v38 }
 0x116   :  { %v1067_v16 = vcombine.low %v397_v5, %v411_v10  ;;  %v439_v48 = vsel %vm1490_vm8, %v434_v37, %v438_v18  ;;  %v492_v1 = vshll.u32 %v380_v51, 16  ;;  %v485_v5 = vrot.slane %v483_v62, 4  ;;  %1154 = vmatpush3.bf16.msra.mxu1 %v1205_v38  ;;  %v1210_v51 = vld [vmem:[%s1741_s10 + $0x28] sm:$0xff]   ;;  %v1051_v62 = vld [vmem:[%s1738_s7] ss:$0 sm:$0xff] }
 0x117   :  { %v1068_v54 = vcombine.low %v425_v32, %v439_v48  ;;  %v461_v56 = vor.u32 %v460_v43, %v457_v42  ;;  %v471_v58 = vrot.slane %v469_v47, 4  ;;  %v453_v3 = vsel %vm1490_vm8, %v448_v59, %v452_v41  ;;  %v592_v43 = vpop.permute.xlu1 %591  ;;  %v1206_v47 = vld [vmem:[%s1741_s10 + $0x10] sm:$0xff]   ;;  %v1208_v48 = vld [vmem:[%s1741_s10 + $0x20] sm:$0xff]  }
 0x118   :  { %571 = vrot.lane.b32.xlu0 %v1067_v16, %s1300_s25  ;;  %v494_v10 = vrot.slane %v492_v1, 5  ;;  %v534_v16 = vsel %vm1473_vm7, %v1059_v2, %v533_v6  ;;  %v489_v18 = vor.u32 %v488_v8, %v485_v5  ;;  %v546_v28 = vsel %vm1473_vm7, %v1062_v21, %v545_v22  ;;  %1155 = vmatprep.subr.bf16.mxu1 %v1206_v47 }
 0x119   :  { %v462_v63 = vrot.slane %v461_v56, 4  ;;  %v475_v4 = vor.u32 %v474_v60, %v471_v58  ;;  %v1073_v26 = vcombine.low %v534_v16, %v538_v14  ;;  %v1074_v33 = vcombine.low %v542_v27, %v546_v28 }
 0x11a   :  { %v490_v25 = vrot.slane %v489_v18, 4  ;;  %1156 = vmatpush3.bf16.msra.mxu1 %v1206_v47  ;;  %v330_v5 = vlaneseq }
 0x11b   :  { %v467_v7 = vsel %vm1490_vm8, %v462_v63, %v466_v57  ;;  %v476_v13 = vrot.slane %v475_v4, 4  ;;  %1157 = vmatprep.subr.bf16.mxu1 %v1207_v29 }
 0x11c   :  { %573 = vrot.lane.b32.xlu0 %v1068_v54, %s1300_s25  ;;  %v1069_v12 = vcombine.low %v453_v3, %v467_v7  ;;  %v495_v23 = vsel %vm1490_vm8, %v490_v25, %v494_v10  ;;  %v1632_v6 = vand.u32 127, %v330_v5 }
 0x11d   :  { %v481_v24 = vsel %vm1490_vm8, %v476_v13, %v480_v61  ;;  %v1066_v61 = vcombine.low %v1539_v30, %v1552_v46 }
 0x11e   :  { %v1070_v32 = vcombine.low %v481_v24, %v495_v23  ;;  %1158 = vmatpush3.bf16.msra.mxu1 %v1207_v29  ;;  %vm332_vm12 = vcmp.lt.s32.totalorder %v1632_v6, 32 }
 0x11f   :  { %1159 = vmatprep.subr.bf16.mxu1 %v1208_v48 }
 0x120   :  { %575 = vrot.lane.b32.xlu0 %v1069_v12, %s1300_s25  ;;  %577 = vrot.lane.b32.xlu1 %v1070_v32, %s1300_s25 }
 0x122   :  { %1160 = vmatpush3.bf16.msra.mxu1 %v1208_v48 }
 0x123   :  { %1161 = vmatprep.subr.bf16.mxu1 %v1210_v51 }
 0x124   :  { %595 = vrot.lane.b32.xlu0 %v1073_v26, %s1299_s5  ;;  %597 = vrot.lane.b32.xlu1 %v1074_v33, %s1299_s5 }
 0x126   :  { %1162 = vmatpush3.bf16.msra.mxu1 %v1210_v51 }
 0x186   :  { %v594_v54 = vpop.permute.xlu1 %593 }
 0x18a   :  { %v572_v41 = vpop.permute.xlu0 %571 }
 0x18b   :  { %v601_v42 = vsel %vm172_vm2, %v1063_v40, %v572_v41 }
 0x18c   :  { %v612_v45 = vsel %vm86_vm1, %v601_v42, %v592_v43 }
 0x18d   :  { %1163 = vmatprep.mubr.msk.bf16.mxu1 %vm674_vm10, %v612_v45 }
 0x18e   :  { %v574_v31 = vpop.permute.xlu0 %573 }
 0x18f   :  { %v604_v56 = vsel %vm172_vm2, %v1064_v52, %v574_v31 }
 0x190   :  { %v614_v60 = vsel %vm86_vm1, %v604_v56, %v594_v54 }
 0x191   :  { %1164 = vmatmul.mubr.msk.bf16.vlgmr.msra.gmra.mrb[0].mxu1 %vm674_vm10, %v614_v60 }
 0x192   :  { %v576_v49 = vpop.permute.xlu0 %575  ;;  %v578_v59 = vpop.permute.xlu1 %577 }
 0x193   :  { %v607_v57 = vsel %vm172_vm2, %v1065_v53, %v576_v49  ;;  %v610_v50 = vsel %vm172_vm2, %v1066_v61, %v578_v59  ;;  %v1301_v49 = vmov 1966171168   ;;  %v1639_v61 = vshrl.u32 %v330_v5, 7  ;;  %v1086_v5 = vld [vmem:[%s1743_s12] ss:$0 sm:$0xff] }
 0x194   :  { %v814_v51 = vunpack.c.l.s4 %v1301_v49 }
 0x196   :  { %v596_v58 = vpop.permute.xlu0 %595  ;;  %v598_v9 = vpop.permute.xlu1 %597 }
 0x197   :  { %v616_v39 = vsel %vm86_vm1, %v607_v57, %v596_v58  ;;  %v618_v15 = vsel %vm86_vm1, %v610_v50, %v598_v9  ;;  %v815_v9 = vunpack.c.0.s8 %v814_v51  ;;  %vm897_vm1 = vcmask 25600  }
 0x198   :  { %1167 = vmatprep.mubr.msk.bf16.mxu1 %vm674_vm10, %v616_v39  ;;  %v1053_v39 = vld [vmem:[%s1739_s8] ss:$0 sm:$0xff]  ;;  %s1303_s8 = smov [#allocation7]  }
 0x199   :  { %1168 = vmatmul.mubr.msk.bf16.gmra.mrb[4].mxu1 %vm674_vm10, %v618_v15 }
 0x1e5   :  { %v242_v35 = vpop.f32.mrb[2].mxu0 }
 0x1e6   :  { %v243_v36 = vadd.f32 %v1049_v34, %v242_v35  ;;  %v1143_v37 = vpop.f32.mrb[3].mxu0 }
 0x1e8   :  { %v246_v55 = vmax.f32 %v243_v36, 0.0 }
 0x1ea   :  { %1149 = vmatmul.mubr.msk.f32.vlgmr.msra.gmra.mrb[4].mxu0 %vm256_vm9, %v246_v55 }
 0x264   :  { %v1165_v1 = vpop.f32.mrb[0].mxu1 }
 0x265   :  { %v717_v2 = vpop.f32.mrb[1].mxu1  ;;  %v726_v21 = vadd.f32 %v1165_v1, %v1075_v20 }
 0x266   :  { %v1166_v3 = vpop.f32.mrb[2].mxu1  ;;  %v718_v14 = vadd.f32 %v1075_v20, %v717_v2 }
 0x267   :  { %v720_v4 = vpop.f32.mrb[3].mxu1  ;;  %v729_v25 = vadd.f32 %v1166_v3, %v1075_v20  ;;  %v750_v34 = vmax.f32 %v726_v21, 0.0 }
 0x268   :  { %v721_v22 = vadd.f32 %v1075_v20, %v720_v4  ;;  %v748_v35 = vmax.f32 %v718_v14, 0.0  ;;  %v1655_v14 = vsub.s32 0, %v1639_v61 }
 0x269   :  { %v751_v37 = vmax.f32 %v729_v25, 0.0  ;;  %v768_v41 = vrot.slane %v750_v34, 4 }
 0x26a   :  { %v749_v36 = vmax.f32 %v721_v22, 0.0  ;;  %v756_v43 = vrot.slane %v748_v35, 4 }
 0x26b   :  { %v774_v45 = vrot.slane %v751_v37, 4  ;;  %v769_v52 = vmax.f32 %v750_v34, %v768_v41 }
 0x26c   :  { %v1169_v16 = vpop.f32.mrb[4].mxu1  ;;  %v762_v42 = vrot.slane %v749_v36, 4  ;;  %v757_v54 = vmax.f32 %v748_v35, %v756_v43 }
 0x26d   :  { %v733_v17 = vpop.f32.mrb[5].mxu1  ;;  %v742_v23 = vadd.f32 %v1169_v16, %v1075_v20  ;;  %v775_v56 = vmax.f32 %v751_v37, %v774_v45  ;;  %v770_v15 = vrot.slane %v769_v52, 2 }
 0x26e   :  { %v1170_v18 = vpop.f32.mrb[6].mxu1  ;;  %v734_v27 = vadd.f32 %v1075_v20, %v733_v17  ;;  %v763_v53 = vmax.f32 %v749_v36, %v762_v42 }
 0x26f   :  { %v736_v19 = vpop.f32.mrb[7].mxu1  ;;  %v745_v33 = vadd.f32 %v1170_v18, %v1075_v20  ;;  %v754_v55 = vmax.f32 %v742_v23, 0.0 }
 0x270   :  { %v737_v28 = vadd.f32 %v1075_v20, %v736_v19  ;;  %v752_v44 = vmax.f32 %v734_v27, 0.0 }
 0x271   :  { %v755_v40 = vmax.f32 %v745_v33, 0.0  ;;  %v792_v47 = vrot.slane %v754_v55, 4 }
 0x272   :  { %v753_v38 = vmax.f32 %v737_v28, 0.0  ;;  %v780_v29 = vrot.slane %v752_v44, 4 }
 0x273   :  { %v798_v48 = vrot.slane %v755_v40, 4  ;;  %v793_v57 = vmax.f32 %v754_v55, %v792_v47 }
 0x274   :  { %v786_v31 = vrot.slane %v753_v38, 4  ;;  %v781_v58 = vmax.f32 %v752_v44, %v780_v29 }
 0x275   :  { %v799_v50 = vmax.f32 %v755_v40, %v798_v48  ;;  %v794_v1 = vrot.slane %v793_v57, 2 }
 0x276   :  { %v787_v59 = vmax.f32 %v753_v38, %v786_v31  ;;  %v782_v2 = vrot.slane %v781_v58, 2 }
 0x277   :  { %v795_v17 = vmax.f32 %v793_v57, %v794_v1 }
 0x278   :  { %v788_v4 = vrot.slane %v787_v59, 2  ;;  %v783_v18 = vmax.f32 %v781_v58, %v782_v2  ;;  %v889_v2 = vsub.s32 %v1632_v6, %v1639_v61 }
 0x279   :  { %v796_v27 = vrot.slane %v795_v17, 1 }
 0x27a   :  { %v789_v20 = vmax.f32 %v787_v59, %v788_v4  ;;  %v784_v28 = vrot.slane %v783_v18, 1 }
 0x27b   :  { %v1666_v41 = vmax.f32 %v795_v17, %v796_v27 }
 0x27c   :  { %v790_v33 = vrot.slane %v789_v20, 1  ;;  %v1668_v42 = vmax.f32 %v783_v18, %v784_v28 }
 0x27e   :  { %v1671_v45 = vmax.f32 %v789_v20, %v790_v33 }
 0x2bd   :  { %v326_v63 = vpop.f32.mrb[4].mxu0 }
 0x2be   :  { %v327_v30 = vadd.f32 %v1051_v62, %v326_v63  ;;  %v1150_v46 = vpop.f32.mrb[5].mxu0  ;;  %v764_v62 = vrot.slane %v763_v53, 2 }
 0x2bf   :  { %v776_v46 = vrot.slane %v775_v56, 2 }
 0x2c0   :  { %v334_v0 = vsel %vm333_vm11, %v327_v30, 0.0 }
 0x2c1   :  { %335 = vadd.xlane.f32.xlu0 %v334_v0  ;;  %v1054_v0 = vld [vmem:[%s1740_s9] ss:$0 sm:$0xff]  ;;  %v777_v16 = vmax.f32 %v775_v56, %v776_v46  ;;  %s1037_s9 = sshll.u32 %s1303_s8, 4  ;;  %s1038_s9 = int_to_ptr.vmem [resolvable:$true] %s1037_s9 }
 0x2c2   :  { %s1266_s12 = scalar_lea.vmem %s1038_s9, 32  ;;  %p1271_p3 = scmp.lt.s32.totalorder %s1038_s9, %s1038_s9 }
 0x2c3   :  { %v778_v23 = vrot.slane %v777_v16, 1  ;;  %p1267_p2 = scmp.ne.s32.totalorder %s1038_s9, %s1266_s12  ;;  %p1272_p4 = scmp.lt.s32.totalorder %s1266_s12, %s1266_s12 }
 0x2c5   :  { %v1664_v40 = vmax.f32 %v777_v16, %v778_v23  ;;  %p1273_p5 = por %p1272_p4, %p1271_p3 }
 0x2c7   :  { %p1274_p6 = pnand %p1273_p5, %p1267_p2 }
 0x34e   :  { %v336_v7 = vpop.xlane.xlu0 %335 }
 0x34f   :  { %v338_v8 = vmul.f32 0.03125, %v336_v7  ;;  %v800_v7 = vrot.slane %v799_v50, 2 }
 0x351   :  { %v339_v10 = vsub.f32 %v327_v30, %v338_v8  ;;  %v758_v30 = vrot.slane %v757_v54, 2  ;;  %v818_v8 = vsub.s32 %v815_v9, %v1639_v61  ;;  %v801_v21 = vmax.f32 %v799_v50, %v800_v7 }
 0x353   :  { %v340_v11 = vsel %vm332_vm12, %v339_v10, 0.0  ;;  %v802_v35 = vrot.slane %v801_v21, 1 }
 0x354   :  { %v341_v12 = vmul.f32 %v340_v11, %v340_v11  ;;  %v771_v11 = vmax.f32 %v769_v52, %v770_v15 }
 0x355   :  { %v1675_v31 = vmax.f32 %v801_v21, %v802_v35 }
 0x356   :  { %v342_v13 = vsel %vm333_vm11, %v341_v12, 0.0  ;;  %v765_v12 = vmax.f32 %v763_v53, %v764_v62  ;;  %v772_v22 = vrot.slane %v771_v11, 1 }
 0x357   :  { %343 = vadd.xlane.f32.xlu1 %v342_v13  ;;  %v759_v13 = vmax.f32 %v757_v54, %v758_v30 }
 0x358   :  { %v1657_v36 = vmax.f32 %v771_v11, %v772_v22  ;;  %v1302_v11 = vmov 0  }
 0x359   :  { %1203 = vset.pattern.permute.xlu1 %v1302_v11  ;;  %1202 = vset.pattern.permute.xlu0 %v1302_v11 }
 0x3e4   :  { %v344_v24 = vpop.xlane.xlu1 %343 }
 0x3e5   :  { %v345_v26 = vmul.f32 0.03125, %v344_v24  ;;  %v766_v24 = vrot.slane %v765_v12, 1 }
 0x3e7   :  { %v346_v32 = vadd.f32 1e-05, %v345_v26  ;;  %v760_v26 = vrot.slane %v759_v13, 1  ;;  %v1659_v37 = vmax.f32 %v765_v12, %v766_v24  ;;  %v908_v12 = vsub.s32 1, %v1639_v61 }
 0x3e9   :  { %1214 = vrsqrt.f32 %v346_v32  ;;  %v1662_v38 = vmax.f32 %v759_v13, %v760_v26 }
 0x3f3   :  { %v1215_v60 = vpop.eup %1214 }
 0x3f4   :  { %v348_v63 = vmul.f32 %v1215_v60, %v339_v10 }
 0x3f6   :  { %v356_v3 = vmul.f32 %v1053_v39, %v348_v63 }
 0x3f8   :  { %v1651_v10 = vadd.f32 %v1054_v0, %v356_v3 }
 0x3fa   :  { %v811_v19 = vadd.f32 %v1086_v5, %v1651_v10  ;;  %v1020_v11 = vrot.slane %v1651_v10, 1 }
 0x3fc   :  { %v819_v25 = vrot.slane %v811_v19, %v818_v8 }
 0x3fe   :  { %v820_v32 = vcombine.high %v819_v25, %v819_v25  ;;  %v827_v34 = vrot.slane %v819_v25, %v818_v8 }
 0x400   :  { %v834_v55 = vrot.slane %v820_v32, %v818_v8  ;;  %v838_v44 = vrot.slane %v827_v34, %v1655_v14 }
 0x402   :  { %v842_v43 = vrot.slane %v834_v55, %v1655_v14  ;;  %v846_v47 = vmul.f32 %v838_v44, %v1659_v37  ;;  %v847_v29 = vmul.f32 %v838_v44, %v1657_v36  ;;  %v848_v48 = vmul.f32 %v838_v44, %v1664_v40 }
 0x403   :  { %v845_v51 = vmul.f32 %v838_v44, %v1662_v38 }
 0x404   :  { %v850_v49 = vmul.f32 %v842_v43, %v1671_v45  ;;  %v861_v52 = vrot.slane %v846_v47, 7  ;;  %v864_v53 = vrot.slane %v847_v29, 6  ;;  %v851_v54 = vmul.f32 %v842_v43, %v1666_v41 }
 0x405   :  { %v852_v56 = vmul.f32 %v842_v43, %v1675_v31  ;;  %v849_v57 = vmul.f32 %v842_v43, %v1668_v42  ;;  %v867_v60 = vrot.slane %v848_v48, 5 }
 0x406   :  { %v870_v58 = vrot.slane %v850_v49, 7  ;;  %v863_v59 = vsel %vm862_vm13, %v861_v52, %v845_v51  ;;  %v872_v50 = vrot.slane %v851_v54, 6 }
 0x407   :  { %v866_v39 = vsel %vm865_vm14, %v864_v53, %v863_v59  ;;  %v874_v62 = vrot.slane %v852_v56, 5 }
 0x408   :  { %v869_v9 = vsel %vm868_vm15, %v867_v60, %v866_v39  ;;  %v871_v15 = vsel %vm862_vm13, %v870_v58, %v849_v57 }
 0x409   :  { %v879_v63 = vsel %vm878_vm0, %v869_v9, 0.0  ;;  %v873_v30 = vsel %vm865_vm14, %v872_v50, %v871_v15 }
 0x40a   :  { %880 = vadd.xlane.f32.xlu0 %v879_v63  ;;  %v875_v46 = vsel %vm868_vm15, %v874_v62, %v873_v30 }
 0x40b   :  { %v882_v0 = vsel %vm878_vm0, %v875_v46, 0.0 }
 0x40e   :  { %883 = vadd.xlane.f32.xlu0 %v882_v0 }
 0x497   :  { %v881_v1 = vpop.xlane.xlu0 %880 }
 0x498   :  { %v890_v4 = vrot.slane %v881_v1, %v889_v2 }
 0x49b   :  { %v884_v3 = vpop.xlane.xlu0 %883 }
 0x49c   :  { %v894_v5 = vrot.slane %v884_v3, %v889_v2 }
 0x49e   :  { %v895_v7 = vsel %vm862_vm13, %v894_v5, %v890_v4 }
 0x49f   :  { %v898_v8 = vsel %vm897_vm1, %v895_v7, -inf }
 0x4a0   :  { %899 = vmax.xlane.f32.xlu1 %v898_v8 }
 0x52d   :  { %v900_v13 = vpop.xlane.xlu1 %899 }
 0x52e   :  { %v905_v16 = vrot.slane %v900_v13, %v1655_v14  ;;  %v909_v17 = vrot.slane %v900_v13, %v908_v12 }
 0x530   :  { %v912_v18 = vsub.f32 %v881_v1, %v905_v16  ;;  %v913_v6 = vsub.f32 %v884_v3, %v909_v17 }
 0x532   :  { %v914_v19 = vmul.f32 1.442695, %v912_v18  ;;  %v916_v20 = vmul.f32 1.442695, %v913_v6 }
 0x534   :  { %1216 = vpow2.f32 %v914_v19 }
 0x535   :  { %1218 = vpow2.f32 %v916_v20 }
 0x53e   :  { %v1217_v21 = vpop.eup %1216 }
 0x53f   :  { %v1219_v22 = vpop.eup %1218  ;;  %921 = vperm.xlu0 %1202, %v1217_v21  }
 0x540   :  { %924 = vperm.xlu1 %1203, %v1219_v22  }
 0x5be   :  { %v922_v24 = vpop.permute.xlu0 %921 }
 0x5bf   :  { %v925_v25 = vpop.permute.xlu1 %924  ;;  %v929_v26 = vrot.slane %v922_v24, %v889_v2 }
 0x5c0   :  { %v933_v23 = vrot.slane %v925_v25, %v889_v2 }
 0x5c2   :  { %v934_v61 = vsel %vm862_vm13, %v933_v23, %v929_v26 }
 0x5c3   :  { %v936_v27 = vsel %vm897_vm1, %v934_v61, 0.0 }
 0x5c4   :  { %937 = vadd.xlane.f32.xlu1 %v936_v27 }
 0x651   :  { %v938_v28 = vpop.xlane.xlu1 %937 }
 0x652   :  { %1220 = vrcp.f32 %v938_v28 }
 0x65c   :  { %v1221_v32 = vpop.eup %1220 }
 0x65d   :  { %v948_v33 = vrot.slane %v1221_v32, %v908_v12  ;;  %v944_v35 = vrot.slane %v1221_v32, %v1655_v14 }
 0x65f   :  { %v952_v34 = vmul.f32 %v1219_v22, %v948_v33  ;;  %v951_v55 = vmul.f32 %v1217_v21, %v944_v35 }
 0x661   :  { %959 = vperm.xlu0 %1202, %v952_v34  }
 0x665   :  { %955 = vperm.xlu0 %1202, %v951_v55  }
 0x6e0   :  { %v960_v44 = vpop.permute.xlu0 %959 }
 0x6e1   :  { %v964_v43 = vrot.slane %v960_v44, 1  ;;  %v965_v47 = vrot.slane %v960_v44, 2  ;;  %v966_v29 = vrot.slane %v960_v44, 3  ;;  %v979_v53 = vmul.f32 %v960_v44, %v1668_v42 }
 0x6e3   :  { %v980_v48 = vmul.f32 %v964_v43, %v1671_v45  ;;  %v981_v49 = vmul.f32 %v965_v47, %v1666_v41  ;;  %v982_v51 = vmul.f32 %v966_v29, %v1675_v31 }
 0x6e4   :  { %v956_v52 = vpop.permute.xlu0 %955 }
 0x6e5   :  { %v997_v54 = vrot.slane %v980_v48, 7  ;;  %v999_v56 = vrot.slane %v981_v49, 6  ;;  %v961_v57 = vrot.slane %v956_v52, 1  ;;  %v962_v14 = vrot.slane %v956_v52, 2 }
 0x6e6   :  { %v963_v58 = vrot.slane %v956_v52, 3  ;;  %v1001_v60 = vrot.slane %v982_v51, 5  ;;  %v975_v42 = vmul.f32 %v956_v52, %v1662_v38 }
 0x6e7   :  { %v998_v59 = vsel %vm862_vm13, %v997_v54, %v979_v53  ;;  %v976_v39 = vmul.f32 %v961_v57, %v1659_v37  ;;  %v977_v45 = vmul.f32 %v962_v14, %v1657_v36 }
 0x6e8   :  { %v1000_v50 = vsel %vm865_vm14, %v999_v56, %v998_v59  ;;  %v978_v41 = vmul.f32 %v963_v58, %v1664_v40 }
 0x6e9   :  { %v1002_v31 = vsel %vm868_vm15, %v1001_v60, %v1000_v50  ;;  %v991_v9 = vrot.slane %v976_v39, 7  ;;  %v993_v62 = vrot.slane %v977_v45, 6 }
 0x6ea   :  { %v1012_v15 = vsel %vm878_vm0, %v1002_v31, 0.0  ;;  %v995_v46 = vrot.slane %v978_v41, 5 }
 0x6eb   :  { %v1013_v63 = vrot.slane %v1012_v15, 4  ;;  %v992_v30 = vsel %vm862_vm13, %v991_v9, %v975_v42 }
 0x6ec   :  { %v994_v37 = vsel %vm865_vm14, %v993_v62, %v992_v30 }
 0x6ed   :  { %v996_v0 = vsel %vm868_vm15, %v995_v46, %v994_v37  ;;  %v1014_v1 = vadd.f32 %v1013_v63, %v1012_v15 }
 0x6ee   :  { %v1005_v36 = vsel %vm878_vm0, %v996_v0, 0.0 }
 0x6ef   :  { %v1006_v40 = vrot.slane %v1005_v36, 4  ;;  %v1015_v2 = vrot.slane %v1014_v1, 2 }
 0x6f1   :  { %v1007_v3 = vadd.f32 %v1006_v40, %v1005_v36  ;;  %v1016_v4 = vadd.f32 %v1015_v2, %v1014_v1 }
 0x6f3   :  { %v1008_v38 = vrot.slane %v1007_v3, 2  ;;  %v1017_v5 = vrot.slane %v1016_v4, 1 }
 0x6f5   :  { %v1009_v7 = vadd.f32 %v1008_v38, %v1007_v3  ;;  %v1018_v8 = vadd.f32 %v1017_v5, %v1016_v4 }
 0x6f7   :  { %v1010_v12 = vrot.slane %v1009_v7, 1  ;;  %v1024_v13 = vadd.f32 %v1020_v11, %v1018_v8 }
 0x6f9   :  { %v1011_v16 = vadd.f32 %v1010_v12, %v1009_v7  ;;  %v1027_v18 = vrot.slane %v1024_v13, 7 }
 0x6fb   :  { %v1023_v17 = vadd.f32 %v1011_v16, %v1651_v10 }
 0x6fd   :  { %v1028_v6 = vsel %vm862_vm13, %v1027_v18, %v1023_v17 }
 0x6fe   :  { %1030 = vst [vmem:[#allocation7] sm:$0x3] %v1028_v6 }
 0x6ff   :  { %1277 = shalt.err (!%p1274_p6)
}
 0x700   :  { %s1278_s6 = scalar_lea.hbm %s1744_s13, 32 }
 0x701   :  { %p1279_p7 = scmp.ne.s32.totalorder %s1744_s13, %s1278_s6  ;;  %p1282_p8 = scmp.lt.u32.totalorder %s1278_s6, %s1744_s13 }
 0x703   :  { %p1284_p9 = pnand %p1282_p8, %p1279_p7 }
 0x705   :  { %1287 = shalt.err (!%p1284_p9)
}
 0x706   :  { %1040 = dma.vmem_to_hbm [thread:$0]  %s1038_s9, 32, %s1744_s13, [#allocation4]  }
 0x707   :  { %1292 = dma.done.wait [#allocation4], 32  }
 0x708   :  { %1293 = vsyncadd [#allocation4], 4294967264 }
 0x709   :  { %1044 = vsyncpa [#allocation3], 1 }
 0x70a   :  { %1045 = vsyncpa [#allocation6], 1 }
 0x70b   :  { %1046 = vsyncpa [#allocation4], 1 }

</bundles_post_ra>
